<compile_context>
chip_gen: v6e
topology: v6e:2x2x1
jax: 0.10.0
libtpu: 0.0.40
codegen_flags: <defaults>
</compile_context>

<pallas_src>
import functools

import jax
import jax.numpy as jnp
from jax.experimental import pallas as pl
from jax.experimental.pallas import tpu as pltpu


def _label_smoothing_kernel(pred_ref, tgt_ref, out_ref, acc_ref, *,
                            confidence, off_value, n_total, tile_n, ragged):
    # pred_ref: (TILE_N, C) native dtype, tgt_ref: (TILE_N, 1) i32
    # out_ref:  (1, 1) f32,  acc_ref: (1, 1) f32 VMEM scratch
    i = pl.program_id(0)

    @pl.when(i == 0)
    def _init():
        acc_ref[...] = jnp.zeros_like(acc_ref)

    logits = pred_ref[...].astype(jnp.float32)           # widen on load (VPU)
    tn, c = logits.shape

    # --- log-softmax normalizer (no full logp tensor materialized) ---
    m = jnp.max(logits, axis=-1, keepdims=True)                          # XLU
    lse = jnp.log(jnp.sum(jnp.exp(logits - m), axis=-1, keepdims=True))  # EUP+XLU
    logz = m + lse                                                       # (TILE_N, 1)

    # --- fused smoothed-target weighted sum (td sums to 1 per row) ---
    tgt = tgt_ref[...]                                                   # (TILE_N, 1)
    col = jax.lax.broadcasted_iota(jnp.int32, (tn, c), 1)
    td = jnp.where(col == tgt, jnp.float32(confidence), jnp.float32(off_value))
    weighted = jnp.sum(td * logits, axis=-1, keepdims=True)              # (TILE_N, 1)

    per_row = logz - weighted                                            # (TILE_N, 1)

    if ragged:
        # mask rows past the true batch size (only the last tile is ragged,
        # masking everywhere is cheaper than a branch on a tiny (TILE_N,1) op)
        row = jax.lax.broadcasted_iota(jnp.int32, (tn, 1), 0) + i * tile_n
        per_row = jnp.where(row < n_total, per_row, 0.0)

    acc_ref[...] += jnp.sum(per_row, keepdims=True)                      # (1, 1)

    @pl.when(i == pl.num_programs(0) - 1)
    def _finalize():
        out_ref[...] = acc_ref[...] / jnp.float32(n_total)


def label_smoothing_loss(pred, target, *, classes, smoothing=0.0,
                         tile_n=512, vmem_budget_bytes=8 << 20,
                         vmem_limit_bytes=None):
    """Pallas equivalent of LabelSmoothingLoss(classes, smoothing).forward.

    pred:   (N, C) float array of logits (any float dtype; widened in-kernel)
    target: (N,)   int array of class indices
    Returns a scalar f32 loss (mean over the batch).
    """
    assert 0.0 <= smoothing < 1.0
    confidence = 1.0 - smoothing
    off_value = smoothing / (classes - 1) if classes > 1 else 0.0

    n, c = pred.shape
    assert c == classes
    tgt2d = target.astype(jnp.int32).reshape(n, 1)

    # VMEM-aware tile choice: double-buffered (TILE_N, C) native-dtype block.
    itemsize = jnp.dtype(pred.dtype).itemsize
    max_tile_vmem = max(8, (vmem_budget_bytes // (2 * c * itemsize)) // 8 * 8)
    if n <= tile_n:
        tile_n = n                                    # full-extent block allowed
    else:
        tile_n = max(8, (min(tile_n, n, max_tile_vmem) // 8) * 8)
    grid = (pl.cdiv(n, tile_n),)
    ragged = (n % tile_n) != 0

    kernel = functools.partial(
        _label_smoothing_kernel,
        confidence=confidence, off_value=off_value,
        n_total=n, tile_n=tile_n, ragged=ragged,
    )

    out = pl.pallas_call(
        kernel,
        out_shape=jax.ShapeDtypeStruct((1, 1), jnp.float32),
        grid_spec=pltpu.PrefetchScalarGridSpec(
            num_scalar_prefetch=0,
            grid=grid,
            in_specs=[
                pl.BlockSpec((tile_n, c), lambda i: (i, 0)),   # logits, native dtype
                pl.BlockSpec((tile_n, 1), lambda i: (i, 0)),   # targets
            ],
            out_specs=pl.BlockSpec((1, 1), lambda i: (0, 0)),  # resident scalar
            scratch_shapes=[pltpu.VMEM((1, 1), jnp.float32)],  # f32 accumulator
        ),
        compiler_params=pltpu.CompilerParams(
            dimension_semantics=("arbitrary",),                # batch axis is a reduction
            vmem_limit_bytes=vmem_limit_bytes,
        ),
    )(pred, tgt2d)
    return out[0, 0]


def _reference(pred, target, *, classes, smoothing):
    confidence = 1.0 - smoothing
    logp = jax.nn.log_softmax(pred.astype(jnp.float32), axis=-1)
    true_dist = jnp.full_like(logp, smoothing / (classes - 1))
    true_dist = true_dist.at[jnp.arange(pred.shape[0]), target].set(confidence)
    return jnp.mean(jnp.sum(-true_dist * logp, axis=-1))


if __name__ == "__main__":
    N, C = 20, 512          # ragged vs tile_n=8 -> exercises last-tile masking
    smoothing = 0.1

    key = jax.random.PRNGKey(0)
    k1, k2 = jax.random.split(key)
    pred = jax.random.normal(k1, (N, C), dtype=jnp.float32)
    target = jax.random.randint(k2, (N,), 0, C, dtype=jnp.int32)

    # f32 path (3 grid steps, last tile has 4 valid rows)
    loss = label_smoothing_loss(pred, target, classes=C, smoothing=smoothing,
                                tile_n=8)
    loss = jax.block_until_ready(loss)
    ref = _reference(pred, target, classes=C, smoothing=smoothing)
    assert jnp.allclose(loss, ref, atol=1e-4, rtol=1e-5), (loss, ref)

    # single-tile path (no ragged masking emitted)
    loss_full = label_smoothing_loss(pred, target, classes=C,
                                     smoothing=smoothing)
    loss_full = jax.block_until_ready(loss_full)
    assert jnp.allclose(loss_full, ref, atol=1e-4, rtol=1e-5), (loss_full, ref)

    # bf16 path: native dtype goes straight into the kernel (no f32 pre-cast)
    pred_bf16 = pred.astype(jnp.bfloat16)
    loss_bf = label_smoothing_loss(pred_bf16, target, classes=C,
                                   smoothing=smoothing, tile_n=8)
    loss_bf = jax.block_until_ready(loss_bf)
    ref_bf = _reference(pred_bf16, target, classes=C, smoothing=smoothing)
    assert jnp.allclose(loss_bf, ref_bf, atol=1e-3, rtol=1e-3), (loss_bf, ref_bf)

    print("KERNEL_OK")
</pallas_src>

<mosaic_0001>
module attributes {stable_mosaic.version = 11 : i64} {
  func.func @_label_smoothing_kernel(%arg0: i32, %arg1: memref<8x512xf32, #tpu.memory_space<vmem>>, %arg2: memref<8x1xi32, #tpu.memory_space<vmem>>, %arg3: memref<1x1xf32, #tpu.memory_space<vmem>>, %arg4: memref<1x1xf32, #tpu.memory_space<vmem>>) attributes {dimension_semantics = [#tpu.dimension_semantics<arbitrary>], iteration_bounds = array<i64: 3>, scalar_prefetch = 0 : i64, scratch_operands = 1 : i64, tpu.core_type = #tpu.core_type<tc>, window_params = [{transform_indices = @transform_0, window_bounds = array<i64: 8, 512>}, {transform_indices = @transform_1, window_bounds = array<i64: 8, 1>}, {pipeline_mode = #tpu.pipeline_mode<synchronous>, transform_indices = @transform_2, window_bounds = array<i64: 1, 1>}]} {
    %c0_i32 = arith.constant 0 : i32
    %0 = arith.cmpi eq, %arg0, %c0_i32 : i32
    %1 = arith.extui %0 : i1 to i32
    %c0_i32_0 = arith.constant 0 : i32
    %2 = arith.cmpi ne, %1, %c0_i32_0 : i32
    scf.if %2 {
      %cst_15 = arith.constant 0.000000e+00 : f32
      %43 = vector.broadcast %cst_15 : f32 to vector<1x1xf32>
      %c0_16 = arith.constant 0 : index
      %c0_17 = arith.constant 0 : index
      %44 = vector.load %arg4[%c0_16, %c0_17] : memref<1x1xf32, #tpu.memory_space<vmem>>, vector<1x1xf32>
      tpu.vector_store %arg4[%c0_16, %c0_17], %43 {strides = array<i32>} : memref<1x1xf32, #tpu.memory_space<vmem>>, vector<1x1xf32>,
    } else {
    }
    %c0 = arith.constant 0 : index
    %c0_1 = arith.constant 0 : index
    %3 = vector.load %arg1[%c0, %c0_1] : memref<8x512xf32, #tpu.memory_space<vmem>>, vector<8x512xf32>
    %cst = arith.constant dense<0xFF800000> : vector<8xf32>
    %4 = vector.multi_reduction <maximumf>, %3, %cst [1] : vector<8x512xf32> to vector<8xf32>
    %5 = vector.shape_cast %4 : vector<8xf32> to vector<8x1xf32>
    %6 = vector.broadcast %5 : vector<8x1xf32> to vector<8x512xf32>
    %7 = arith.subf %3, %6 : vector<8x512xf32>
    %8 = math.exp %7 : vector<8x512xf32>
    %cst_2 = arith.constant dense<0.000000e+00> : vector<8xf32>
    %9 = vector.multi_reduction <add>, %8, %cst_2 [1] : vector<8x512xf32> to vector<8xf32>
    %10 = vector.shape_cast %9 : vector<8xf32> to vector<8x1xf32>
    %11 = math.log %10 : vector<8x1xf32>
    %12 = arith.addf %5, %11 : vector<8x1xf32>
    %c0_3 = arith.constant 0 : index
    %c0_4 = arith.constant 0 : index
    %13 = vector.load %arg2[%c0_3, %c0_4] : memref<8x1xi32, #tpu.memory_space<vmem>>, vector<8x1xi32>
    %14 = tpu.iota {dimensions = array<i32: 1>} : vector<8x512xi32>
    %15 = vector.broadcast %13 : vector<8x1xi32> to vector<8x512xi32>
    %16 = arith.cmpi eq, %14, %15 : vector<8x512xi32>
    %cst_5 = arith.constant 0.899999976 : f32
    %cst_6 = arith.constant 1.95694724E-4 : f32
    %17 = vector.broadcast %cst_5 : f32 to vector<8x512xf32>
    %18 = vector.broadcast %cst_6 : f32 to vector<8x512xf32>
    %19 = arith.select %16, %17, %18 : vector<8x512xi1>, vector<8x512xf32>
    %20 = arith.mulf %19, %3 : vector<8x512xf32>
    %cst_7 = arith.constant dense<0.000000e+00> : vector<8xf32>
    %21 = vector.multi_reduction <add>, %20, %cst_7 [1] : vector<8x512xf32> to vector<8xf32>
    %22 = vector.shape_cast %21 : vector<8xf32> to vector<8x1xf32>
    %23 = arith.subf %12, %22 : vector<8x1xf32>
    %24 = tpu.iota {dimensions = array<i32: 0>} : vector<8x1xi32>
    %c8_i32 = arith.constant 8 : i32
    %25 = arith.muli %arg0, %c8_i32 : i32
    %26 = vector.broadcast %25 : i32 to vector<8x1xi32>
    %27 = arith.addi %24, %26 : vector<8x1xi32>
    %c20_i32 = arith.constant 20 : i32
    %28 = vector.broadcast %c20_i32 : i32 to vector<8x1xi32>
    %29 = arith.cmpi slt, %27, %28 : vector<8x1xi32>
    %cst_8 = arith.constant 0.000000e+00 : f32
    %30 = vector.broadcast %cst_8 : f32 to vector<8x1xf32>
    %31 = arith.select %29, %23, %30 : vector<8x1xi1>, vector<8x1xf32>
    %c0_9 = arith.constant 0 : index
    %c0_10 = arith.constant 0 : index
    %32 = vector.load %arg4[%c0_9, %c0_10] : memref<1x1xf32, #tpu.memory_space<vmem>>, vector<1x1xf32>
    %33 = vector.shape_cast %31 : vector<8x1xf32> to vector<1x8x1xf32>
    %cst_11 = arith.constant dense<0.000000e+00> : vector<1xf32>
    %34 = vector.multi_reduction <add>, %33, %cst_11 [1, 2] : vector<1x8x1xf32> to vector<1xf32>
    %35 = vector.shape_cast %34 : vector<1xf32> to vector<1x1x1xf32>
    %36 = vector.extract %35[0, 0, 0] : f32 from vector<1x1x1xf32>
    %37 = vector.broadcast %36 : f32 to vector<1x1xf32>
    %38 = arith.addf %32, %37 : vector<1x1xf32>
    %c0_12 = arith.constant 0 : index
    %c0_13 = arith.constant 0 : index
    %39 = vector.load %arg4[%c0_12, %c0_13] : memref<1x1xf32, #tpu.memory_space<vmem>>, vector<1x1xf32>
    tpu.vector_store %arg4[%c0_12, %c0_13], %38 {strides = array<i32>} : memref<1x1xf32, #tpu.memory_space<vmem>>, vector<1x1xf32>,
    %c2_i32 = arith.constant 2 : i32
    %40 = arith.cmpi eq, %arg0, %c2_i32 : i32
    %41 = arith.extui %40 : i1 to i32
    %c0_i32_14 = arith.constant 0 : i32
    %42 = arith.cmpi ne, %41, %c0_i32_14 : i32
    scf.if %42 {
      %c0_15 = arith.constant 0 : index
      %c0_16 = arith.constant 0 : index
      %43 = vector.load %arg4[%c0_15, %c0_16] : memref<1x1xf32, #tpu.memory_space<vmem>>, vector<1x1xf32>
      %cst_17 = arith.constant 2.000000e+01 : f32
      %44 = vector.broadcast %cst_17 : f32 to vector<1x1xf32>
      %45 = arith.divf %43, %44 : vector<1x1xf32>
      %c0_18 = arith.constant 0 : index
      %c0_19 = arith.constant 0 : index
      %46 = vector.load %arg3[%c0_18, %c0_19] : memref<1x1xf32, #tpu.memory_space<vmem>>, vector<1x1xf32>
      tpu.vector_store %arg3[%c0_18, %c0_19], %45 {strides = array<i32>} : memref<1x1xf32, #tpu.memory_space<vmem>>, vector<1x1xf32>,
    } else {
    }
    return
  }
  func.func @transform_0(%arg0: i32) -> (i32, i32) {
    %c0_i32 = arith.constant 0 : i32
    %c0_i32_0 = arith.constant 0 : i32
    return %arg0, %c0_i32 : i32, i32
  }
  func.func @transform_1(%arg0: i32) -> (i32, i32) {
    %c0_i32 = arith.constant 0 : i32
    %c0_i32_0 = arith.constant 0 : i32
    return %arg0, %c0_i32 : i32, i32
  }
  func.func @transform_2(%arg0: i32) -> (i32, i32) {
    %c0_i32 = arith.constant 0 : i32
    %c0_i32_0 = arith.constant 0 : i32
    %c0_i32_1 = arith.constant 0 : i32
    return %c0_i32, %c0_i32_0 : i32, i32
  }
}

</mosaic_0001>

<bundles_post_ra>
// kernel: tpu_custom_call.1
= control target key start
LH: loop header
LB: loop body
LE: loop exit
PB: predicated region body
PF: predicated region fallthrough
CT: control target
= control target key end

     0   :  { %7 = vsyncpa [#allocation4], 0  ;;  %s633_s0 = inlined_call_operand.hbm [shape: f32[20,512], index: 0, kind: input, shape index: {}]   ;;  %s634_s1 = inlined_call_operand.vmem [shape: s32[20,1], index: 1, kind: input, shape index: {}]   ;;  %s635_s2 = inlined_call_operand.hbm [shape: f32[1,1], index: 2, kind: output, shape index: {}]  }
   0x1   :  { %9 = vsyncpa [#allocation4 + $0x1], 0 }
   0x2   :  { %10 = vsyncpa [#allocation5], 0  ;;  %s518_s9 = smov 0   ;;  %s520_s10 = smov 0  }
   0x3   :  { %s522_s11 = smov 0   ;;  %s524_s12 = smov 0  }
   0x4 LB: > { %s537_s13 = sadd.s32 4294967295, %s496_s12   ;;  %s540_s14 = sadd.s32 1, %s496_s12   ;;  %s496_s12 = sphi %s524_s12, %s645_s12   ;;  %s492_s11 = sphi %s522_s11, %s644_s11   ;;  %s488_s10 = sphi %s520_s10, %s643_s10   ;;  %s484_s9 = sphi %s518_s9, %s642_s9  }
   0x5   : > { %s20_s15 = ssub.s32 %s496_s12, %s540_s14  ;;  %s23_s16 = sadd.s32 1, %s492_s11 }
   0x6   : > { %p21_p0 = scmp.eq.s32.totalorder %s20_s15, 0  ;;  %p30_p1 = scmp.ne.s32.totalorder %s492_s11, %s488_s10 }
   0x7   : > { %p31_p2 = scmp.eq.s32.totalorder %s496_s12, 0  ;;  %p36_p3 = scmp.ne.s32.totalorder %s488_s10, %s484_s9 }
   0x8   : > { %s550_s17 = scalar_select %p21_p0, %s492_s11, %s23_s16  }
   0x9   : > { %p32_p4 = por %p31_p2, %p30_p1  ;;  %p37_p5 = scmp.eq.s32.totalorder %s537_s13, 0 }
   0xa   : > { %p356_p6 = scmp.lt.s32.totalorder %s496_s12, 3  ;;  %s107_s19 = sand.u32 1, %s492_s11  }
   0xb   : > { %p554_p7 = por %p37_p5, %p36_p3  ;;  %s330_s20 = sshll.u32 %s107_s19, 5 }
   0xc   : > { %s343_s21 = sshll.u32 %s496_s12, 9  ;;  %s111_s25 = scalar_lea.vmem [#allocation3], %s330_s20 }
   0xd   : > { %s637_s18 = scalar_select %p554_p7, 1, 0 }
   0xe   : > { %s563_s24 = scalar_lea.hbm %s633_s0, %s343_s21  ;;  %s119_s26 = sshll.u32 %s111_s25, 4  ;;  %s565_s26 = int_to_ptr.vmem [resolvable:$true] %s119_s26 }
   0xf   : > { %p567_p8 = pnand %p356_p6, %p32_p4  ;;  %s108_s28 = scalar_lea.sflag [#allocation4], %s107_s19 }
  0x10   : > { %s406_s29 = scalar_lea.hbm %s563_s24, 512  ;;  %s411_s4 = scalar_lea.hbm %s633_s0, 1536 }
  0x11   : > { %p407_p11 = scmp.ne.s32.totalorder %s563_s24, %s406_s29  ;;  %p408_p12 = pneg %p567_p8 }
  0x12   : > { %p412_p1 = scmp.lt.s32.totalorder %s563_s24, %s633_s0  ;;  %p413_p2 = scmp.lt.s32.totalorder %s411_s4, %s406_s29 }
  0x13   : > { %p409_p13 = pnand %p408_p12, %p407_p11 }
  0x14   : > { %p414_p3 = por %p413_p2, %p412_p1 }
  0x15   : > { %p410_p0 = pneg %p409_p13 }
  0x17   : > { %p415_p4 = pnand %p414_p3, %p410_p0 }
  0x19   : > { %418 = shalt.err (!%p415_p4)
}
  0x1a   : > { %s419_s7 = scalar_lea.vmem %s565_s26, 512  ;;  %s498_s8 = smov [#allocation3]  }
  0x1b   : > { %p420_p5 = scmp.ne.s32.totalorder %s565_s26, %s419_s7  ;;  %s424_s9 = sshll.u32 %s498_s8, 4  ;;  %s425_s9 = int_to_ptr.vmem [resolvable:$false] %s424_s9 }
  0x1c   : > { %s426_s15 = scalar_lea.vmem %s425_s9, 1024  ;;  %p427_p13 = scmp.lt.s32.totalorder %s565_s26, %s425_s9 }
  0x1d   : > { %p422_p6 = pnand %p420_p5, %p408_p12  ;;  %p428_p9 = scmp.lt.s32.totalorder %s426_s15, %s419_s7 }
  0x1f   : > { %p423_p11 = pneg %p422_p6  ;;  %p429_p10 = por %p428_p9, %p427_p13 }
  0x21   : > { %p430_p7 = pnand %p429_p10, %p423_p11 }
  0x23   : > { %433 = shalt.err (!%p430_p7)
}
  0x24   : > { %355 = dma.hbm_to_vmem [thread:$0]  (!%p567_p8), %s563_s24, 512, %s565_s26, %s108_s28  }
  0x25   : > { %p639_p0 = scmp.lt.s32.totalorder %s496_s12, 4  ;;  %p640_p1 = scmp.ge.s32.totalorder %s496_s12, 1 }
  0x27   : > { %p132_p12 = pnand %p640_p1, %p639_p0 }
  0x28   : > { %s137_s16 = sand.u32 (!%p132_p12), 1, %s488_s10   ;;  %p641_p9 = scmp.ne.s32.totalorder (!%p132_p12), %s637_s18, 0 }
  0x29   : > { %135 = sbr.rel (%p132_p12) target bundleno = 615 (0x267), region = 28  ;;  %s334_s19 = sshll.u32 (!%p132_p12), %s137_s16, 5 }
  0x2a   : > { %s138_s20 = scalar_lea.sflag (!%p132_p12), [#allocation4], %s137_s16  ;;  %s141_s21 = scalar_lea.vmem (!%p132_p12), [#allocation3], %s334_s19 }
  0x2e   : > { %475 = dma.done.wait (%p641_p9), %s138_s20, 512  }
  0x2f   : > { %477 = vsyncadd (%p641_p9), %s138_s20, 4294966784  ;;  %p161_p7 = scmp.lt.s32.totalorder %s537_s13, 2  ;;  %p336_p8 = scmp.ne.s32.totalorder %s537_s13, 0 }
  0x31   : > { %s162_s22 = scalar_select %p161_p7, %s537_s13, 2 }
  0x32   : > { %168 = sbr.rel (%p336_p8) target bundleno = 57 (0x39), region = 36 }
  0x33   : > { %s335_s23 = sshll.u32 %s162_s22, 3 }
  0x34   : > { %s164_s25 = scalar_lea.vmem %s634_s1, %s335_s23 }
  0x37   : > { %vm169_vm0 = vcmask 0   ;;  %v499_v0 = vmov 0.0  }
  0x38   : > { %170 = vst.msk [vmem:[#allocation2] sm:$0x1] %vm169_vm0, %v499_v0 }
  0x39 PF: > { %v171_v1 = vld [vmem:[%s141_s21] sm:$0xff]  ;;  %v172_v2 = vld [vmem:[%s141_s21 + $0x8] sm:$0xff]  ;;  %v173_v3 = vld [vmem:[%s141_s21 + $0x10] sm:$0xff]  ;;  %v500_v6 = vmov 0   ;;  %v201_v10 = vlaneseq  ;;  %v501_v24 = vmov 0.00019569472  }
  0x3a   : > { %v174_v4 = vld [vmem:[%s141_s21 + $0x18] sm:$0xff]  ;;  %v175_v5 = vmax.f32 %v171_v1, %v172_v2  ;;  %395 = vset.pattern.permute.xlu0 %v500_v6  ;;  %s337_s18 = sshll.u32 %s537_s13, 3  ;;  %vm235_vm6 = vcmask 7168   ;;  %vm248_vm7 = vcmask 0   ;;  %p338_p10 = scmp.ne.s32.totalorder %s537_s13, 2 }
  0x3b   : > { %v176_v7 = vmax.f32 %v173_v3, %v174_v4  ;;  %v200_v9 = vld [vmem:[%s164_s25] sm:$0xff]  ;;  %v202_v15 = vand.u32 127, %v201_v10  ;;  %v228_v45 = vshrl.u32 %v201_v10, 7  ;;  %v230_v46 = vstv %s337_s18 }
  0x3d   : > { %v177_v8 = vmax.f32 %v175_v5, %v176_v7  ;;  %v203_v20 = vadd.s32 128, %v202_v15  ;;  %v204_v22 = vadd.s32 256, %v202_v15  ;;  %v205_v27 = vadd.s32 384, %v202_v15 }
  0x3e   : > { %v231_v48 = vadd.s32 %v230_v46, %v228_v45 }
  0x3f   : > { %178 = vmax.xlane.f32.xlu0 %v177_v8  ;;  %v234_v62 = vld [vmem:[#allocation2] sm:$0x1] }
  0x40   : > { %vm232_vm5 = vcmp.lt.s32.totalorder %v231_v48, 20 }
  0x55   : > { %207 = vperm.xlu0 %395, %v200_v9  }
  0xc8   : > { %v179_v11 = vpop.xlane.xlu0 %178 }
  0xc9   : > { %v180_v12 = vsub.f32 %v171_v1, %v179_v11  ;;  %v181_v13 = vsub.f32 %v172_v2, %v179_v11  ;;  %v182_v14 = vsub.f32 %v173_v3, %v179_v11  ;;  %v183_v16 = vsub.f32 %v174_v4, %v179_v11 }
  0xcb   : > { %v184_v17 = vmul.f32 1.442695, %v180_v12  ;;  %v186_v18 = vmul.f32 1.442695, %v181_v13  ;;  %v188_v19 = vmul.f32 1.442695, %v182_v14 }
  0xcc   : > { %v190_v21 = vmul.f32 1.442695, %v183_v16 }
  0xcd   : > { %396 = vpow2.f32 %v184_v17 }
  0xce   : > { %398 = vpow2.f32 %v186_v18 }
  0xcf   : > { %400 = vpow2.f32 %v188_v19 }
  0xd0   : > { %v208_v23 = vpop.permute.xlu0 %207  ;;  %402 = vpow2.f32 %v190_v21 }
  0xd1   : > { %vm209_vm1 = vcmp.eq.s32.totalorder %v202_v15, %v208_v23  ;;  %vm210_vm2 = vcmp.eq.s32.totalorder %v203_v20, %v208_v23  ;;  %vm211_vm3 = vcmp.eq.s32.totalorder %v204_v22, %v208_v23  ;;  %vm212_vm4 = vcmp.eq.s32.totalorder %v205_v27, %v208_v23 }
  0xd2   : > { %v213_v25 = vsel %vm209_vm1, 0.9, %v501_v24  ;;  %v214_v26 = vsel %vm210_vm2, 0.9, %v501_v24  ;;  %v215_v30 = vsel %vm211_vm3, 0.9, %v501_v24 }
  0xd3   : > { %v217_v28 = vmul.f32 %v213_v25, %v171_v1  ;;  %v218_v29 = vmul.f32 %v214_v26, %v172_v2  ;;  %v219_v32 = vmul.f32 %v215_v30, %v173_v3  ;;  %v216_v35 = vsel %vm212_vm4, 0.9, %v501_v24 }
  0xd4   : > { %v220_v39 = vmul.f32 %v216_v35, %v174_v4 }
  0xd5   : > { %v221_v33 = vadd.f32 %v218_v29, %v217_v28 }
  0xd7   : > { %v222_v40 = vadd.f32 %v221_v33, %v219_v32 }
  0xd9   : > { %v223_v43 = vadd.f32 %v222_v40, %v220_v39 }
  0xda   : > { %v397_v31 = vpop.eup %396 }
  0xdb   : > { %v399_v34 = vpop.eup %398 }
  0xdc   : > { %v192_v36 = vadd.f32 %v399_v34, %v397_v31  ;;  %v401_v37 = vpop.eup %400 }
  0xdd   : > { %v403_v41 = vpop.eup %402 }
  0xde   : > { %v193_v38 = vadd.f32 %v401_v37, %v192_v36 }
  0xe0   : > { %v194_v42 = vadd.f32 %v403_v41, %v193_v38 }
  0xe2   : > { %195 = vadd.xlane.f32.xlu1 %v194_v42 }
  0xe6   : > { %224 = vadd.xlane.f32.xlu1 %v223_v43 }
 0x16b   : > { %v196_v44 = vpop.xlane.xlu1 %195 }
 0x16c   : > { %404 = vlog2.f32 %v196_v44 }
 0x16f   : > { %v225_v51 = vpop.xlane.xlu1 %224 }
 0x179   : > { %v405_v47 = vpop.eup %404 }
 0x17a   : > { %v198_v49 = vmul.f32 0.6931472, %v405_v47 }
 0x17c   : > { %v199_v50 = vadd.f32 %v198_v49, %v179_v11 }
 0x17e   : > { %v226_v52 = vsub.f32 %v199_v50, %v225_v51 }
 0x180   : > { %v233_v53 = vsel %vm232_vm5, %v226_v52, 0.0 }
 0x181   : > { %v236_v54 = vsel %vm235_vm6, %v233_v53, 0.0 }
 0x182   : > { %237 = vadd.xlane.f32.xlu1 %v236_v54 }
 0x20b   : > { %v238_v55 = vpop.xlane.xlu1 %237 }
 0x20c   : > { %v239_v56 = vrot.slane %v238_v55, 4 }
 0x20e   : > { %v240_v57 = vadd.f32 %v239_v56, %v238_v55 }
 0x210   : > { %v241_v58 = vrot.slane %v240_v57, 2 }
 0x212   : > { %v242_v59 = vadd.f32 %v241_v58, %v240_v57 }
 0x214   : > { %v243_v60 = vrot.slane %v242_v59, 1 }
 0x216   : > { %v244_v61 = vadd.f32 %v243_v60, %v242_v59 }
 0x218   : > { %344 = vpush %v244_v61 }
 0x249   : > { %s345_s26 = spop %344  ;;  %253 = sbr.rel (%p338_p10) target bundleno = 600 (0x258), region = 40 }
 0x24a   : > { %v246_v63 = vstv %s345_s26 }
 0x24b   : > { %v247_v0 = vadd.f32 %v246_v63, %v234_v62 }
 0x24d   : > { %249 = vst.msk [vmem:[#allocation2] sm:$0x1] %vm248_vm7, %v247_v0 }
 0x254   : > { %v254_v1 = vld [vmem:[#allocation2] sm:$0x1] }
 0x255   : > { %v256_v2 = vmul.f32 0.05, %v254_v1 }
 0x257   : > { %257 = vst.msk [vmem:[#allocation6] sm:$0x1] %vm248_vm7, %v256_v2 }
 0x258 PF: > { %p357_p2 = scmp.eq.s32.totalorder %s537_s13, 2  ;;  %s502_s27 = smov [#allocation6]  }
 0x259   : > { %s265_s28 = sshll.u32 %s502_s27, 4  ;;  %s266_s28 = int_to_ptr.vmem [resolvable:$true] %s265_s28 }
 0x25a   : > { %s434_s29 = scalar_lea.vmem %s266_s28, 16  ;;  %s440_s30 = scalar_lea.vmem %s266_s28, 32 }
 0x25b   : > { %p435_p3 = scmp.ne.s32.totalorder %s266_s28, %s434_s29  ;;  %p441_p6 = scmp.lt.s32.totalorder %s266_s28, %s266_s28 }
 0x25c   : > { %p442_p11 = scmp.lt.s32.totalorder %s440_s30, %s434_s29 }
 0x25d   : > { %p436_p4 = pnand %p435_p3, %p357_p2 }
 0x25e   : > { %p443_p13 = por %p442_p11, %p441_p6 }
 0x25f   : > { %p437_p5 = pneg %p436_p4 }
 0x261   : > { %p444_p0 = pnand %p443_p13, %p437_p5 }
 0x263   : > { %447 = shalt.err (!%p444_p0)
}
 0x264   : > { %349 = dma.vmem_to_hbm [thread:$0]  (%p357_p2), %s266_s28, 16, %s635_s2, [#allocation5]  }
 0x265   : > { %479 = dma.done.wait (%p357_p2), [#allocation5], 16  }
 0x266   : > { %481 = vsyncadd (%p357_p2), [#allocation5], 4294967280 }
 0x267 PF: > { %p13_p1 = scmp.ge.s32.totalorder %s540_s14, 5   ;;  %s642_s9 = smov %s488_s10 }
 0x268   : > { %s643_s10 = smov %s492_s11  ;;  %s644_s11 = smov %s550_s17 }
 0x269   : > { %s645_s12 = smov %s540_s14  ;;  %15 = sbr.rel (!%p13_p1) target bundleno = 4 (0x4), region = 76 }
 0x26e   :  { %278 = vsyncpa [#allocation4], 1 }
 0x26f   :  { %280 = vsyncpa [#allocation4 + $0x1], 1 }
 0x270   :  { %281 = vsyncpa [#allocation5], 1 }
 0x271   :  { %283 = vsyncpa [#allocation5 + $0x1], 1 }

</bundles_post_ra>
